<compile_context>
chip_gen: v7x
topology: tpu7x:2x2x1
jax: 0.10.0
libtpu: 0.0.40
codegen_flags: <defaults>
</compile_context>

<pallas_src>
from functools import partial

import jax
import jax.numpy as jnp
from jax.experimental import pallas as pl
from jax.experimental.pallas import tpu as pltpu


def _conv_bn_relu_kernel(x_ref, wb_ref, s_ref, st_ref, gamma_ref, beta_ref, o_ref,
                         *, N, H, W, Cin, Cout, K, Wp, eps):
    # x_ref:     (N, Hp, Wp*Cin)     zero-padded input, (w, ci) packed on lanes
    # wb_ref:    (K, Wp*Cin, W*Cout) banded conv weights (one band per kernel row)
    # s_ref:     (W*Cout, Cout)      0/1 gather matrix: packed lanes -> channels
    # st_ref:    (Cout, W*Cout)      0/1 scatter matrix: channels -> packed lanes
    # gamma_ref, beta_ref: (1, Cout)
    # o_ref:     (N*H, W*Cout)       lane-dense output slab
    x = x_ref[...]

    # ---- convolution: shift-and-accumulate over kernel rows, one banded MXU ----
    # ---- matmul per kh (kw and ci are folded into the band matrix)          ----
    acc = jnp.zeros((N * H, W * Cout), jnp.float32)
    for kh in range(K):  # K == 3, statically unrolled
        xs = x[:, kh:kh + H, :].reshape(N * H, Wp * Cin)           # (N*H, Wp*Cin)
        acc += jnp.dot(xs, wb_ref[kh], preferred_element_type=jnp.float32)

    # ---- BatchNorm2d (training-mode biased batch stats), single pass over acc ----
    m = float(N * H * W)
    s_col = jnp.sum(acc, axis=0, keepdims=True)              # (1, W*Cout)
    ss_col = jnp.sum(acc * acc, axis=0, keepdims=True)        # (1, W*Cout)
    s_ch = jnp.dot(s_col, s_ref[...], preferred_element_type=jnp.float32)    # (1, Cout)
    ss_ch = jnp.dot(ss_col, s_ref[...], preferred_element_type=jnp.float32)  # (1, Cout)
    mean = s_ch / m
    var = ss_ch / m - mean * mean                             # biased batch variance
    a_ch = gamma_ref[...] * jax.lax.rsqrt(var + eps)          # (1, Cout)
    b_ch = beta_ref[...] - mean * a_ch                        # (1, Cout)
    # broadcast per-channel scale/shift back to the packed (w, co) lane layout
    a_col = jnp.dot(a_ch, st_ref[...], preferred_element_type=jnp.float32)   # (1, W*Cout)
    b_col = jnp.dot(b_ch, st_ref[...], preferred_element_type=jnp.float32)   # (1, W*Cout)

    # ---- fused affine + ReLU, fully lane-dense store ----
    o_ref[...] = jnp.maximum(acc * a_col + b_col, 0.0).astype(o_ref.dtype)


@partial(jax.jit, static_argnames=("eps",))
def conv_bn_relu(x_nchw, weight_oihw, gamma, beta, *, eps=1e-5):
    """Forward pass of ConvBNReLU. Returns NCHW float32, same as the PyTorch module."""
    N, Cin, H, W = x_nchw.shape
    Cout, Cin_w, K, _ = weight_oihw.shape
    assert Cin_w == Cin
    pad = K // 2                      # dilation == 1 path of the module
    Hp, Wp = H + 2 * pad, W + 2 * pad

    # Layout glue (fused by jit into one XLA fusion feeding the kernel):
    # NCHW -> NHWC, zero-pad spatially, pack (W, Cin) onto the lane axis.
    x = jnp.transpose(x_nchw, (0, 2, 3, 1)).astype(jnp.float32)      # (N, H, W, Cin)
    x = jnp.pad(x, ((0, 0), (pad, pad), (pad, pad), (0, 0)))         # (N, Hp, Wp, Cin)
    x_packed = x.reshape(N, Hp, Wp * Cin)                            # (N, Hp, Wp*Cin)

    # Banded weight matrices: one (Wp*Cin, W*Cout) band per kernel row kh, with
    # B[kh, (w+kw)*Cin + ci, w*Cout + co] = weight[co, ci, kh, kw].
    wk = jnp.transpose(weight_oihw, (2, 3, 1, 0)).astype(jnp.float32)  # (K, K, Cin, Cout)
    wp_idx = jnp.arange(Wp)[:, None]
    w_idx = jnp.arange(W)[None, :]
    band = jnp.zeros((K, Wp, Cin, W, Cout), jnp.float32)
    for kw in range(K):
        mask = (wp_idx == w_idx + kw).astype(jnp.float32)             # (Wp, W)
        band = band + jnp.einsum('pw,kio->kpiwo', mask, wk[:, kw])
    wb = band.reshape(K, Wp * Cin, W * Cout)

    # Constant 0/1 matrices mapping packed lanes (w*Cout + co) <-> channels co.
    col_ch = jnp.arange(W * Cout) % Cout
    s_mat = (col_ch[:, None] == jnp.arange(Cout)[None, :]).astype(jnp.float32)  # (W*Cout, Cout)
    st_mat = s_mat.T                                                            # (Cout, W*Cout)

    g2 = gamma.reshape(1, Cout).astype(jnp.float32)
    b2 = beta.reshape(1, Cout).astype(jnp.float32)

    kernel = partial(_conv_bn_relu_kernel,
                     N=N, H=H, W=W, Cin=Cin, Cout=Cout, K=K, Wp=Wp, eps=eps)

    out_packed = pl.pallas_call(
        kernel,
        out_shape=jax.ShapeDtypeStruct((N * H, W * Cout), jnp.float32),
        in_specs=[pl.BlockSpec(memory_space=pltpu.MemorySpace.VMEM)] * 6,
        out_specs=pl.BlockSpec(memory_space=pltpu.MemorySpace.VMEM),
    )(x_packed, wb, s_mat, st_mat, g2, b2)

    # Unpack the lane-dense slab back to NCHW (fused by jit with the call output).
    out = out_packed.reshape(N, H, W, Cout)
    return jnp.transpose(out, (0, 3, 1, 2))


def _reference(x_nchw, weight_oihw, gamma, beta, eps=1e-5):
    """Pure-JAX reference replicating the PyTorch forward (training-mode BN)."""
    y = jax.lax.conv_general_dilated(
        x_nchw.astype(jnp.float32), weight_oihw.astype(jnp.float32),
        window_strides=(1, 1), padding="SAME",
        dimension_numbers=("NCHW", "OIHW", "NCHW"))
    mean = jnp.mean(y, axis=(0, 2, 3), keepdims=True)
    var = jnp.mean((y - mean) ** 2, axis=(0, 2, 3), keepdims=True)
    y = (y - mean) * jax.lax.rsqrt(var + eps)
    y = y * gamma[None, :, None, None] + beta[None, :, None, None]
    return jnp.maximum(y, 0.0)


if __name__ == "__main__":
    # Module config: in_ch=4, out_ch=8, kernel_size=3, dilation=1 -> padding=1
    N, Cin, H, W = 2, 4, 16, 16
    Cout, K = 8, 3

    key = jax.random.PRNGKey(0)
    kx, kw, kg, kb = jax.random.split(key, 4)

    x = jax.random.normal(kx, (N, Cin, H, W), dtype=jnp.float32)
    # Deterministic parameter init (synthetic; shapes from nn.Conv2d / nn.BatchNorm2d)
    weight = jax.random.normal(kw, (Cout, Cin, K, K), dtype=jnp.float32) * 0.1
    gamma = 1.0 + 0.1 * jax.random.normal(kg, (Cout,), dtype=jnp.float32)
    beta = 0.1 * jax.random.normal(kb, (Cout,), dtype=jnp.float32)

    out = conv_bn_relu(x, weight, gamma, beta)
    out = jax.block_until_ready(out)

    ref = _reference(x, weight, gamma, beta)
    assert out.shape == (N, Cout, H, W), out.shape
    assert jnp.allclose(out, ref, atol=1e-4, rtol=1e-4), float(jnp.max(jnp.abs(out - ref)))

    print("KERNEL_OK")
</pallas_src>

<mosaic_0001>
module attributes {stable_mosaic.version = 11 : i64} {
  func.func @_conv_bn_relu_kernel(%arg0: memref<2x18x72xf32, #tpu.memory_space<vmem>>, %arg1: memref<3x72x128xf32, #tpu.memory_space<vmem>>, %arg2: memref<128x8xf32, #tpu.memory_space<vmem>>, %arg3: memref<8x128xf32, #tpu.memory_space<vmem>>, %arg4: memref<1x8xf32, #tpu.memory_space<vmem>>, %arg5: memref<1x8xf32, #tpu.memory_space<vmem>>, %arg6: memref<32x128xf32, #tpu.memory_space<vmem>>) attributes {dimension_semantics = [], scalar_prefetch = 0 : i64, scratch_operands = 0 : i64, tpu.core_type = #tpu.core_type<tc>} {
    %c0 = arith.constant 0 : index
    %c0_0 = arith.constant 0 : index
    %c0_1 = arith.constant 0 : index
    %0 = vector.load %arg0[%c0, %c0_0, %c0_1] : memref<2x18x72xf32, #tpu.memory_space<vmem>>, vector<2x18x72xf32>
    %cst = arith.constant 0.000000e+00 : f32
    %1 = vector.broadcast %cst : f32 to vector<32x128xf32>
    %2 = vector.extract_strided_slice %0 {offsets = [0, 0, 0], sizes = [2, 16, 72], strides = [1, 1, 1]} : vector<2x18x72xf32> to vector<2x16x72xf32>
    %3 = vector.shape_cast %2 : vector<2x16x72xf32> to vector<32x72xf32>
    %c0_2 = arith.constant 0 : index
    %c0_3 = arith.constant 0 : index
    %c0_4 = arith.constant 0 : index
    %4 = vector.load %arg1[%c0_2, %c0_3, %c0_4] : memref<3x72x128xf32, #tpu.memory_space<vmem>>, vector<1x72x128xf32>
    %5 = vector.shape_cast %4 : vector<1x72x128xf32> to vector<72x128xf32>
    %cst_5 = arith.constant dense<0.000000e+00> : vector<32x128xf32>
    %6 = tpu.matmul %3, %5, %cst_5 {dimension_numbers = #tpu.dot_dimension_numbers<[1], [0], [0], [1], [0, 0, 1, 1], [], []>} : vector<32x72xf32>, vector<72x128xf32>, vector<32x128xf32> -> vector<32x128xf32>
    %7 = arith.addf %1, %6 : vector<32x128xf32>
    %8 = vector.extract_strided_slice %0 {offsets = [0, 1, 0], sizes = [2, 16, 72], strides = [1, 1, 1]} : vector<2x18x72xf32> to vector<2x16x72xf32>
    %9 = vector.shape_cast %8 : vector<2x16x72xf32> to vector<32x72xf32>
    %c1 = arith.constant 1 : index
    %c0_6 = arith.constant 0 : index
    %c0_7 = arith.constant 0 : index
    %10 = vector.load %arg1[%c1, %c0_6, %c0_7] : memref<3x72x128xf32, #tpu.memory_space<vmem>>, vector<1x72x128xf32>
    %11 = vector.shape_cast %10 : vector<1x72x128xf32> to vector<72x128xf32>
    %cst_8 = arith.constant dense<0.000000e+00> : vector<32x128xf32>
    %12 = tpu.matmul %9, %11, %cst_8 {dimension_numbers = #tpu.dot_dimension_numbers<[1], [0], [0], [1], [0, 0, 1, 1], [], []>} : vector<32x72xf32>, vector<72x128xf32>, vector<32x128xf32> -> vector<32x128xf32>
    %13 = arith.addf %7, %12 : vector<32x128xf32>
    %14 = vector.extract_strided_slice %0 {offsets = [0, 2, 0], sizes = [2, 16, 72], strides = [1, 1, 1]} : vector<2x18x72xf32> to vector<2x16x72xf32>
    %15 = vector.shape_cast %14 : vector<2x16x72xf32> to vector<32x72xf32>
    %c2 = arith.constant 2 : index
    %c0_9 = arith.constant 0 : index
    %c0_10 = arith.constant 0 : index
    %16 = vector.load %arg1[%c2, %c0_9, %c0_10] : memref<3x72x128xf32, #tpu.memory_space<vmem>>, vector<1x72x128xf32>
    %17 = vector.shape_cast %16 : vector<1x72x128xf32> to vector<72x128xf32>
    %cst_11 = arith.constant dense<0.000000e+00> : vector<32x128xf32>
    %18 = tpu.matmul %15, %17, %cst_11 {dimension_numbers = #tpu.dot_dimension_numbers<[1], [0], [0], [1], [0, 0, 1, 1], [], []>} : vector<32x72xf32>, vector<72x128xf32>, vector<32x128xf32> -> vector<32x128xf32>
    %19 = arith.addf %13, %18 : vector<32x128xf32>
    %cst_12 = arith.constant dense<0.000000e+00> : vector<128xf32>
    %20 = vector.multi_reduction <add>, %19, %cst_12 [0] : vector<32x128xf32> to vector<128xf32>
    %21 = vector.shape_cast %20 : vector<128xf32> to vector<1x128xf32>
    %22 = arith.mulf %19, %19 : vector<32x128xf32>
    %cst_13 = arith.constant dense<0.000000e+00> : vector<128xf32>
    %23 = vector.multi_reduction <add>, %22, %cst_13 [0] : vector<32x128xf32> to vector<128xf32>
    %24 = vector.shape_cast %23 : vector<128xf32> to vector<1x128xf32>
    %c0_14 = arith.constant 0 : index
    %c0_15 = arith.constant 0 : index
    %25 = vector.load %arg2[%c0_14, %c0_15] : memref<128x8xf32, #tpu.memory_space<vmem>>, vector<128x8xf32>
    %cst_16 = arith.constant dense<0.000000e+00> : vector<1x8xf32>
    %26 = tpu.matmul %21, %25, %cst_16 {dimension_numbers = #tpu.dot_dimension_numbers<[1], [0], [0], [1], [0, 0, 1, 1], [], []>} : vector<1x128xf32>, vector<128x8xf32>, vector<1x8xf32> -> vector<1x8xf32>
    %c0_17 = arith.constant 0 : index
    %c0_18 = arith.constant 0 : index
    %27 = vector.load %arg2[%c0_17, %c0_18] : memref<128x8xf32, #tpu.memory_space<vmem>>, vector<128x8xf32>
    %cst_19 = arith.constant dense<0.000000e+00> : vector<1x8xf32>
    %28 = tpu.matmul %24, %27, %cst_19 {dimension_numbers = #tpu.dot_dimension_numbers<[1], [0], [0], [1], [0, 0, 1, 1], [], []>} : vector<1x128xf32>, vector<128x8xf32>, vector<1x8xf32> -> vector<1x8xf32>
    %cst_20 = arith.constant 5.120000e+02 : f32
    %29 = vector.broadcast %cst_20 : f32 to vector<1x8xf32>
    %30 = arith.divf %26, %29 : vector<1x8xf32>
    %cst_21 = arith.constant 5.120000e+02 : f32
    %31 = vector.broadcast %cst_21 : f32 to vector<1x8xf32>
    %32 = arith.divf %28, %31 : vector<1x8xf32>
    %33 = arith.mulf %30, %30 : vector<1x8xf32>
    %34 = arith.subf %32, %33 : vector<1x8xf32>
    %c0_22 = arith.constant 0 : index
    %c0_23 = arith.constant 0 : index
    %35 = vector.load %arg4[%c0_22, %c0_23] : memref<1x8xf32, #tpu.memory_space<vmem>>, vector<1x8xf32>
    %cst_24 = arith.constant 9.99999974E-6 : f32
    %36 = vector.broadcast %cst_24 : f32 to vector<1x8xf32>
    %37 = arith.addf %34, %36 : vector<1x8xf32>
    %38 = math.rsqrt %37 : vector<1x8xf32>
    %39 = arith.mulf %35, %38 : vector<1x8xf32>
    %c0_25 = arith.constant 0 : index
    %c0_26 = arith.constant 0 : index
    %40 = vector.load %arg5[%c0_25, %c0_26] : memref<1x8xf32, #tpu.memory_space<vmem>>, vector<1x8xf32>
    %41 = arith.mulf %30, %39 : vector<1x8xf32>
    %42 = arith.subf %40, %41 : vector<1x8xf32>
    %c0_27 = arith.constant 0 : index
    %c0_28 = arith.constant 0 : index
    %43 = vector.load %arg3[%c0_27, %c0_28] : memref<8x128xf32, #tpu.memory_space<vmem>>, vector<8x128xf32>
    %cst_29 = arith.constant dense<0.000000e+00> : vector<1x128xf32>
    %44 = tpu.matmul %39, %43, %cst_29 {dimension_numbers = #tpu.dot_dimension_numbers<[1], [0], [0], [1], [0, 0, 1, 1], [], []>} : vector<1x8xf32>, vector<8x128xf32>, vector<1x128xf32> -> vector<1x128xf32>
    %c0_30 = arith.constant 0 : index
    %c0_31 = arith.constant 0 : index
    %45 = vector.load %arg3[%c0_30, %c0_31] : memref<8x128xf32, #tpu.memory_space<vmem>>, vector<8x128xf32>
    %cst_32 = arith.constant dense<0.000000e+00> : vector<1x128xf32>
    %46 = tpu.matmul %42, %45, %cst_32 {dimension_numbers = #tpu.dot_dimension_numbers<[1], [0], [0], [1], [0, 0, 1, 1], [], []>} : vector<1x8xf32>, vector<8x128xf32>, vector<1x128xf32> -> vector<1x128xf32>
    %47 = vector.broadcast %44 : vector<1x128xf32> to vector<32x128xf32>
    %48 = arith.mulf %19, %47 : vector<32x128xf32>
    %49 = vector.broadcast %46 : vector<1x128xf32> to vector<32x128xf32>
    %50 = arith.addf %48, %49 : vector<32x128xf32>
    %cst_33 = arith.constant 0.000000e+00 : f32
    %51 = vector.broadcast %cst_33 : f32 to vector<32x128xf32>
    %52 = arith.maximumf %50, %51 : vector<32x128xf32>
    %c0_34 = arith.constant 0 : index
    %c0_35 = arith.constant 0 : index
    %53 = vector.load %arg6[%c0_34, %c0_35] : memref<32x128xf32, #tpu.memory_space<vmem>>, vector<32x128xf32>
    tpu.vector_store %arg6[%c0_34, %c0_35], %52 {strides = array<i32>} : memref<32x128xf32, #tpu.memory_space<vmem>>, vector<32x128xf32>,
    return
  }
}

</mosaic_0001>

<bundles_post_ra>
// kernel: conv_bn_relu.1
= control target key start
LH: loop header
LB: loop body
LE: loop exit
PB: predicated region body
PF: predicated region fallthrough
CT: control target
= control target key end

     0   :  { %v1106_v3 = vmov 0.0|0.0   ;;  %vm44_vm0 = vcmask 1046528   ;;  %vm65_vm1 = vcmask 588800   ;;  %vm252_vm2 = vcmask 1045504   ;;  %s1422_s1 = inlined_call_operand.vmem [shape: f32[3,72,128], index: 1, kind: input, shape index: {}]   ;;  %s1423_s0 = inlined_call_operand.vmem [shape: f32[2,18,72], index: 0, kind: input, shape index: {}]   ;;  %s1424_s2 = inlined_call_operand.vmem [shape: f32[128,8], index: 2, kind: input, shape index: {}]   ;;  %s1425_s3 = inlined_call_operand.vmem [shape: f32[8,128], index: 3, kind: input, shape index: {}]   ;;  %s1426_s4 = inlined_call_operand.vmem [shape: f32[1,8], index: 4, kind: input, shape index: {}]   ;;  %s1427_s5 = inlined_call_operand.vmem [shape: f32[1,8], index: 5, kind: input, shape index: {}]   ;;  %s1428_s6 = inlined_call_operand.vmem [shape: f32[32,128], index: 6, kind: output, shape index: {}]  }
   0x1   :  { %v736_v0 = vld [vmem:[%s1422_s1 + $0x48] sm:$0xff]  ;;  %v737_v1 = vld [vmem:[%s1422_s1 + $0x50] sm:$0xff]  ;;  %v738_v2 = vld [vmem:[%s1422_s1 + $0x58] sm:$0xff]  ;;  %1045 = vmatprep.subr.bf16.mxu1 %v1106_v3  ;;  %vm1107_vm3 = vmmov 0   ;;  %vm561_vm4 = vcmask 64512  }
   0x2   :  { %v997_v4 = vpack.c.bf16 %v737_v1, %v736_v0  ;;  %v739_v5 = vld [vmem:[%s1422_s1 + $0x60] sm:$0xff]  ;;  %v740_v7 = vld [vmem:[%s1422_s1 + $0x68] sm:$0xff]  ;;  %v741_v8 = vld [vmem:[%s1422_s1 + $0x70] sm:$0xff] }
   0x3   :  { %v1001_v6 = vpack.c.bf16 %v739_v5, %v738_v2  ;;  %v1166_v9 = vld [vmem:[%s1423_s0] sm:$0xff]  ;;  %v1171_v10 = vld [vmem:[%s1423_s0 + $0x8] sm:$0xff]  ;;  %v1005_v13 = vpack.c.bf16 %v741_v8, %v740_v7  ;;  %v742_v14 = vld [vmem:[%s1422_s1 + $0x78] sm:$0xff] }
   0x4   :  { %998 = vmatprep.subr.bf16.mxu0 %v997_v4  ;;  %v45_v11 = vrot.slane %v1166_v9, 1  ;;  %v46_v12 = vrot.slane %v1171_v10, 1  ;;  %v743_v15 = vld [vmem:[%s1422_s1 + $0x80] sm:$0xff]  ;;  %v1186_v18 = vld [vmem:[%s1423_s0 + $0x10] sm:$0x3]  ;;  %v393_v20 = vld [vmem:[%s1424_s2 + $0x8] sm:$0xff] }
   0x5   :  { %1000 = vmatpush3.bf16.msra.mxu0 %v997_v4  ;;  %v1009_v17 = vpack.c.bf16 %v743_v15, %v742_v14  ;;  %v392_v19 = vld [vmem:[%s1424_s2] sm:$0xff]  ;;  %v394_v21 = vld [vmem:[%s1424_s2 + $0x10] sm:$0xff]  ;;  %v1200_v22 = vld [vmem:[%s1423_s0 + $0x18] sm:$0xff]  ;;  %v48_v29 = vrot.slane %v1186_v18, 1  ;;  %v253_v58 = vrot.slane %v1166_v9, 2  ;;  %v254_v59 = vrot.slane %v1171_v10, 2 }
   0x6   :  { %1002 = vmatprep.subr.bf16.mxu0 %v1001_v6  ;;  %v47_v16 = vsel %vm44_vm0, %v45_v11, %v46_v12  ;;  %v1205_v23 = vld [vmem:[%s1423_s0 + $0x20] sm:$0xff]  ;;  %v1207_v24 = vpack.c.bf16 %v393_v20, %v392_v19  ;;  %v395_v25 = vld [vmem:[%s1424_s2 + $0x18] sm:$0xff]  ;;  %v744_v26 = vld [vmem:[%s1422_s1 + $0x88] sm:$0xff]  ;;  %v50_v32 = vrot.slane %v1200_v22, 1  ;;  %v256_v4 = vrot.slane %v1186_v18, 2 }
   0x7   :  { %863 = vmatprep.mubr.msk.f32.mxu0 %vm65_vm1, %v47_v16  ;;  %v29_v27 = vld [vmem:[%s1422_s1] sm:$0xff]  ;;  %v30_v28 = vld [vmem:[%s1422_s1 + $0x8] sm:$0xff]  ;;  %v1223_v30 = vpack.c.bf16 %v395_v25, %v394_v21  ;;  %v31_v31 = vld [vmem:[%s1422_s1 + $0x10] sm:$0xff]  ;;  %v51_v33 = vrot.slane %v1205_v23, 1  ;;  %v49_v39 = vsel %vm44_vm0, %v46_v12, %v48_v29  ;;  %v255_v63 = vsel %vm252_vm2, %v253_v58, %v254_v59 }
   0x8   :  { %1047 = vmatpush3.bf16.msra.mxu1 %v1207_v24  ;;  %v1233_v34 = vld [vmem:[%s1423_s0 + $0x28] sm:$0x3]  ;;  %v32_v35 = vld [vmem:[%s1422_s1 + $0x18] sm:$0xff]  ;;  %v396_v36 = vld [vmem:[%s1424_s2 + $0x20] sm:$0xff]  ;;  %v1013_v38 = vpack.c.bf16 %v30_v28, %v29_v27  ;;  %v259_v7 = vrot.slane %v1205_v23, 2  ;;  %v257_v8 = vsel %vm252_vm2, %v254_v59, %v256_v4  ;;  %v1108_v28 = vmov 0.0  }
   0x9   :  { %1004 = vmatpush3.bf16.msra.mxu0 %v1001_v6  ;;  %1048 = vmatprep.subr.bf16.mxu1 %v1106_v3  ;;  %v397_v37 = vld [vmem:[%s1424_s2 + $0x28] sm:$0xff]  ;;  %v53_v40 = vrot.slane %v1233_v34, 1  ;;  %v1017_v41 = vpack.c.bf16 %v32_v35, %v31_v31  ;;  %v52_v42 = vsel %vm44_vm0, %v50_v32, %v51_v33  ;;  %v33_v44 = vld [vmem:[%s1422_s1 + $0x20] sm:$0xff]  ;;  %v35_v48 = vld [vmem:[%s1422_s1 + $0x30] sm:$0xff]  ;;  %v258_v6 = vrot.slane %v1200_v22, 2 }
   0xa   :  { %1006 = vmatprep.subr.bf16.mxu0 %v1005_v13  ;;  %v1250_v43 = vpack.c.bf16 %v397_v37, %v396_v36  ;;  %v34_v45 = vld [vmem:[%s1422_s1 + $0x28] sm:$0xff]  ;;  %v36_v49 = vld [vmem:[%s1422_s1 + $0x38] sm:$0xff]  ;;  %v37_v51 = vld [vmem:[%s1422_s1 + $0x40] sm:$0xff]  ;;  %949 = vmatprep.mubr.msk.f32.mxu1 %vm1107_vm3, %v1108_v28 }
   0xb   :  { %v54_v46 = vsel %vm44_vm0, %v51_v33, %v53_v40  ;;  %v1021_v47 = vpack.c.bf16 %v34_v45, %v33_v44  ;;  %v1025_v50 = vpack.c.bf16 %v36_v49, %v35_v48  ;;  %v753_v52 = vld [vmem:[%s1422_s1 + $0x90] sm:$0xff]  ;;  %v754_v53 = vld [vmem:[%s1422_s1 + $0x98] sm:$0xff]  ;;  %v755_v54 = vld [vmem:[%s1422_s1 + $0xa0] sm:$0xff] }
   0xc   :  { %1050 = vmatpush3.bf16.msra.mxu1 %v1223_v30  ;;  %v756_v55 = vld [vmem:[%s1422_s1 + $0xa8] sm:$0xff]  ;;  %v1029_v56 = vpack.c.bf16 %v754_v53, %v753_v52  ;;  %v757_v60 = vld [vmem:[%s1422_s1 + $0xb0] sm:$0xff]  ;;  %v758_v61 = vld [vmem:[%s1422_s1 + $0xb8] sm:$0xff] }
   0xd   :  { %1008 = vmatpush3.bf16.msra.mxu0 %v1005_v13  ;;  %1051 = vmatprep.subr.bf16.mxu1 %v1106_v3  ;;  %v1033_v57 = vpack.c.bf16 %v756_v55, %v755_v54  ;;  %v1037_v62 = vpack.c.bf16 %v758_v61, %v757_v60  ;;  %v759_v0 = vld [vmem:[%s1422_s1 + $0xc0] sm:$0xff]  ;;  %v760_v1 = vld [vmem:[%s1422_s1 + $0xc8] sm:$0xff]  ;;  %v761_v5 = vld [vmem:[%s1422_s1 + $0xd0] sm:$0xff] }
   0xe   :  { %1010 = vmatprep.subr.bf16.mxu0 %v1009_v17  ;;  %v1041_v2 = vpack.c.bf16 %v760_v1, %v759_v0  ;;  %v398_v12 = vld [vmem:[%s1424_s2 + $0x30] sm:$0xff]  ;;  %v399_v13 = vld [vmem:[%s1424_s2 + $0x38] sm:$0xff]  ;;  %v400_v15 = vld [vmem:[%s1424_s2 + $0x40] sm:$0xff] }
   0xf   :  { %v1055_v14 = vpack.c.bf16 %v399_v13, %v398_v12  ;;  %v401_v16 = vld [vmem:[%s1424_s2 + $0x48] sm:$0xff]  ;;  %v402_v18 = vld [vmem:[%s1424_s2 + $0x50] sm:$0xff]  ;;  %v403_v19 = vld [vmem:[%s1424_s2 + $0x58] sm:$0xff] }
  0x10   :  { %1053 = vmatpush3.bf16.msra.mxu1 %v1250_v43  ;;  %v1061_v20 = vpack.c.bf16 %v403_v19, %v402_v18  ;;  %v404_v21 = vld [vmem:[%s1424_s2 + $0x60] sm:$0xff]  ;;  %v406_v25 = vld [vmem:[%s1424_s2 + $0x70] sm:$0xff] }
  0x11   :  { %1012 = vmatpush3.bf16.msra.mxu0 %v1009_v17  ;;  %1054 = vmatprep.subr.bf16.mxu1 %v1106_v3  ;;  %v1058_v17 = vpack.c.bf16 %v401_v16, %v400_v15  ;;  %v560_v54 = vld [vmem:[%s1425_s3] sm:$0xff] }
  0x12   :  { %861 = vmatprep.subr.mxu0 %v744_v26 }
  0x14   :  { %1056 = vmatpush3.bf16.msra.mxu1 %v1055_v14 }
  0x15   :  { %862 = vmatpush3.msra.mxu0 %v744_v26  ;;  %1057 = vmatprep.subr.bf16.mxu1 %v1106_v3  ;;  %v407_v26 = vld [vmem:[%s1424_s2 + $0x78] sm:$0xff] }
  0x16   :  { %1014 = vmatprep.subr.bf16.mxu0 %v1013_v38  ;;  %864 = vmatmul.mubr.msk.f32.vlgmr.msra.gmra.mrb[0].mxu0 %vm65_vm1, %v49_v39  ;;  %v1067_v27 = vpack.c.bf16 %v407_v26, %v406_v25 }
  0x17   :  { %1016 = vmatpush3.bf16.msra.mxu0 %v1013_v38  ;;  %866 = vmatprep.mubr.msk.f32.mxu0 %vm65_vm1, %v52_v42 }
  0x18   :  { %1018 = vmatprep.subr.bf16.mxu0 %v1017_v41  ;;  %1059 = vmatpush3.bf16.msra.mxu1 %v1058_v17 }
  0x19   :  { %1060 = vmatprep.subr.bf16.mxu1 %v1106_v3 }
  0x1a   :  { %867 = vmatmul.mubr.msk.f32.gmra.mrb[2].mxu0 %vm65_vm1, %v54_v46 }
  0x1b   :  { %1020 = vmatpush3.bf16.msra.mxu0 %v1017_v41  ;;  %887 = vmatprep.mubr.msk.f32.mxu0 %vm65_vm1, %v1166_v9  ;;  %v261_v9 = vrot.slane %v1233_v34, 2 }
  0x1c   :  { %1022 = vmatprep.subr.bf16.mxu0 %v1021_v47  ;;  %1062 = vmatpush3.bf16.msra.mxu1 %v1061_v20 }
  0x1d   :  { %v262_v11 = vsel %vm252_vm2, %v259_v7, %v261_v9  ;;  %1063 = vmatprep.subr.bf16.mxu1 %v1106_v3 }
  0x1f   :  { %1024 = vmatpush3.bf16.msra.mxu0 %v1021_v47 }
  0x20   :  { %1026 = vmatprep.subr.bf16.mxu0 %v1025_v50 }
  0x23   :  { %1028 = vmatpush3.bf16.msra.mxu0 %v1025_v50 }
  0x24   :  { %885 = vmatprep.subr.mxu0 %v37_v51 }
  0x27   :  { %886 = vmatpush3.msra.mxu0 %v37_v51 }
  0x28   :  { %1030 = vmatprep.subr.bf16.mxu0 %v1029_v56  ;;  %888 = vmatmul.mubr.msk.f32.vlgmr.msra.gmra.mrb[0].mxu0 %vm65_vm1, %v1171_v10  ;;  %v260_v10 = vsel %vm252_vm2, %v258_v6, %v259_v7  ;;  %v708_v6 = vlaneseq }
  0x29   :  { %1032 = vmatpush3.bf16.msra.mxu0 %v1029_v56  ;;  %890 = vmatprep.mubr.msk.f32.mxu0 %vm65_vm1, %v1200_v22  ;;  %v405_v22 = vld [vmem:[%s1424_s2 + $0x68] sm:$0xff] }
  0x2a   :  { %1034 = vmatprep.subr.bf16.mxu0 %v1033_v57  ;;  %v709_v7 = vshrl.u32 %v708_v6, 7 }
  0x2c   :  { %891 = vmatmul.mubr.msk.f32.gmra.mrb[2].mxu0 %vm65_vm1, %v1205_v23  ;;  %v1064_v23 = vpack.c.bf16 %v405_v22, %v404_v21 }
  0x2d   :  { %1036 = vmatpush3.bf16.msra.mxu0 %v1033_v57  ;;  %911 = vmatprep.mubr.msk.f32.mxu0 %vm65_vm1, %v255_v63  ;;  %v553_v63 = vld [vmem:[%s1426_s4] sm:$0x1] }
  0x2e   :  { %1038 = vmatprep.subr.bf16.mxu0 %v1037_v62  ;;  %1065 = vmatpush3.bf16.msra.mxu1 %v1064_v23 }
  0x2f   :  { %1066 = vmatprep.subr.bf16.mxu1 %v1106_v3 }
  0x31   :  { %1040 = vmatpush3.bf16.msra.mxu0 %v1037_v62 }
  0x32   :  { %1042 = vmatprep.subr.bf16.mxu0 %v1041_v2  ;;  %1068 = vmatpush3.bf16.msra.mxu1 %v1067_v27 }
  0x33   :  { %1069 = vmatprep.subr.bf16.mxu1 %v1106_v3 }
  0x35   :  { %1044 = vmatpush3.bf16.msra.mxu0 %v1041_v2  ;;  %v557_v2 = vld [vmem:[%s1427_s5] sm:$0x1] }
  0x36   :  { %909 = vmatprep.subr.mxu0 %v761_v5 }
  0x39   :  { %910 = vmatpush3.msra.mxu0 %v761_v5 }
  0x3a   :  { %912 = vmatmul.mubr.msk.f32.vlgmr.msra.gmra.mrb[0].mxu0 %vm65_vm1, %v257_v8  ;;  %987 = vmatprep.subr.mxu0 %v1108_v28  ;;  %v710_v8 = vsub.s32 0, %v709_v7 }
  0x3b   :  { %914 = vmatprep.mubr.msk.f32.mxu0 %vm65_vm1, %v260_v10  ;;  %988 = vmatpush3.msra.mxu0 %v560_v54 }
  0x3c   :  { %992 = vmatprep.subr.mxu0 %v1108_v28 }
  0x3e   :  { %915 = vmatmul.mubr.msk.f32.gmra.mrb[2].mxu0 %vm65_vm1, %v262_v11 }
  0x3f   :  { %989 = vmatprep.mubr.msk.f32.mxu0 %vm1107_vm3, %v1108_v28 }
 0x10d   :  { %v1362_v29 = vpop.f32.mrb[0].mxu0 }
 0x10e   :  { %v380_v31 = vmul.f32 %v1362_v29, %v1362_v29  ;;  %v1366_v32 = vpop.f32.mrb[1].mxu0 }
 0x10f   :  { %v370_v33 = vadd.f32 %v1362_v29, %v1366_v32  ;;  %v379_v34 = vmul.f32 %v1366_v32, %v1366_v32 }
 0x111   :  { %v383_v35 = vadd.f32 %v380_v31, %v379_v34  ;;  %v1372_v36 = vpop.f32.mrb[2].mxu0 }
 0x112   :  { %v1374_v37 = vpop.f32.mrb[3].mxu0  ;;  %v382_v40 = vmul.f32 %v1372_v36, %v1372_v36 }
 0x113   :  { %v371_v38 = vadd.f32 %v370_v33, %v1374_v37  ;;  %v381_v39 = vmul.f32 %v1374_v37, %v1374_v37 }
 0x115   :  { %v372_v41 = vadd.f32 %v1372_v36, %v371_v38  ;;  %v384_v42 = vadd.f32 %v383_v35, %v381_v39 }
 0x117   :  { %v373_v44 = vrot.slane %v372_v41, 4  ;;  %v385_v45 = vadd.f32 %v384_v42, %v382_v40 }
 0x119   :  { %v374_v46 = vadd.f32 %v373_v44, %v372_v41  ;;  %v386_v51 = vrot.slane %v385_v45, 4 }
 0x11b   :  { %v375_v47 = vrot.slane %v374_v46, 2  ;;  %v387_v52 = vadd.f32 %v386_v51, %v385_v45 }
 0x11d   :  { %v376_v48 = vadd.f32 %v375_v47, %v374_v46 }
 0x11f   :  { %v377_v49 = vrot.slane %v376_v48, 1 }
 0x121   :  { %v378_v50 = vadd.f32 %v377_v49, %v376_v48 }
 0x123   :  { %950 = vmatmul.mubr.f32.vlgmr.msra.gmra.mrb[0].mxu1 %v378_v50 }
 0x124   :  { %1071 = vmatpush3.bf16.msra.mxu1 %v1207_v24  ;;  %984 = vmatprep.mubr.msk.f32.mxu1 %vm1107_vm3, %v1108_v28  ;;  %v388_v24 = vrot.slane %v387_v52, 2 }
 0x125   :  { %1072 = vmatprep.subr.bf16.mxu1 %v1106_v3 }
 0x126   :  { %v389_v53 = vadd.f32 %v388_v24, %v387_v52 }
 0x128   :  { %1074 = vmatpush3.bf16.msra.mxu1 %v1223_v30  ;;  %v390_v30 = vrot.slane %v389_v53, 1 }
 0x129   :  { %1075 = vmatprep.subr.bf16.mxu1 %v1106_v3 }
 0x12c   :  { %1077 = vmatpush3.bf16.msra.mxu1 %v1250_v43  ;;  %v391_v43 = vadd.f32 %v390_v30, %v389_v53 }
 0x12d   :  { %1078 = vmatprep.subr.bf16.mxu1 %v1106_v3 }
 0x130   :  { %1080 = vmatpush3.bf16.msra.mxu1 %v1055_v14 }
 0x131   :  { %1081 = vmatprep.subr.bf16.mxu1 %v1106_v3 }
 0x134   :  { %1083 = vmatpush3.bf16.msra.mxu1 %v1058_v17 }
 0x135   :  { %1084 = vmatprep.subr.bf16.mxu1 %v1106_v3 }
 0x138   :  { %1086 = vmatpush3.bf16.msra.mxu1 %v1061_v20 }
 0x139   :  { %1087 = vmatprep.subr.bf16.mxu1 %v1106_v3 }
 0x13c   :  { %1089 = vmatpush3.bf16.msra.mxu1 %v1064_v23 }
 0x13d   :  { %1090 = vmatprep.subr.bf16.mxu1 %v1106_v3 }
 0x140   :  { %1092 = vmatpush3.bf16.msra.mxu1 %v1067_v27 }
 0x143   :  { %985 = vmatmul.mubr.f32.vlgmr.msra.gmra.mrb[2].mxu1 %v391_v43 }
 0x1f6   :  { %v474_v55 = vpop.f32.mrb[0].mxu1 }
 0x1f7   :  { %v951_v56 = vpop.f32.mrb[1].mxu1  ;;  %v549_v57 = vmul.f32 0.001953125, %v474_v55 }
 0x1f9   :  { %v551_v59 = vmul.f32 %v549_v57, %v549_v57 }
 0x216   :  { %v544_v58 = vpop.f32.mrb[2].mxu1 }
 0x217   :  { %v550_v60 = vmul.f32 0.001953125, %v544_v58  ;;  %v986_v61 = vpop.f32.mrb[3].mxu1 }
 0x219   :  { %v552_v62 = vsub.f32 %v550_v60, %v551_v59 }
 0x21b   :  { %v554_v3 = vadd.f32 1e-05, %v552_v62 }
 0x21d   :  { %1104 = vrsqrt.f32 %v554_v3 }
 0x227   :  { %v1105_v0 = vpop.eup %1104 }
 0x228   :  { %v556_v1 = vmul.f32 %v1105_v0, %v553_v63 }
 0x22a   :  { %990 = vmatmul.mubr.msk.f32.vlgmr.msra.gmra.mrb[4].mxu0 %vm561_vm4, %v556_v1  ;;  %v558_v4 = vmul.f32 %v556_v1, %v549_v57 }
 0x22b   :  { %993 = vmatpush3.msra.mxu0 %v560_v54  ;;  %994 = vmatprep.mubr.msk.f32.mxu0 %vm1107_vm3, %v1108_v28 }
 0x22c   :  { %v559_v5 = vsub.f32 %v557_v2, %v558_v4 }
 0x22e   :  { %995 = vmatmul.mubr.msk.f32.vlgmr.msra.gmra.mrb[6].mxu0 %vm561_vm4, %v559_v5 }
 0x2fd   :  { %v631_v9 = vpop.f32.mrb[4].mxu0 }
 0x2fe   :  { %v711_v10 = vrot.slane %v631_v9, %v710_v8  ;;  %v991_v11 = vpop.f32.mrb[5].mxu0 }
 0x300   :  { %v712_v12 = vmul.f32 %v711_v10, %v1366_v32  ;;  %v713_v13 = vmul.f32 %v1362_v29, %v711_v10  ;;  %v714_v14 = vmul.f32 %v711_v10, %v1374_v37  ;;  %v715_v15 = vmul.f32 %v1372_v36, %v711_v10 }
 0x301   :  { %v704_v16 = vpop.f32.mrb[6].mxu0 }
 0x302   :  { %v719_v17 = vrot.slane %v704_v16, %v710_v8  ;;  %v996_v18 = vpop.f32.mrb[7].mxu0 }
 0x304   :  { %v720_v19 = vadd.f32 %v719_v17, %v712_v12  ;;  %v721_v20 = vadd.f32 %v719_v17, %v713_v13  ;;  %v722_v21 = vadd.f32 %v719_v17, %v714_v14  ;;  %v723_v22 = vadd.f32 %v719_v17, %v715_v15 }
 0x306   :  { %v724_v23 = vmax.f32 %v720_v19, 0.0  ;;  %v725_v25 = vmax.f32 %v721_v20, 0.0  ;;  %v726_v26 = vmax.f32 %v722_v21, 0.0  ;;  %v727_v27 = vmax.f32 %v723_v22, 0.0 }
 0x308   :  { %728 = vst [vmem:[%s1428_s6] sm:$0xff] %v724_v23  ;;  %729 = vst [vmem:[%s1428_s6 + $0x8] sm:$0xff] %v725_v25 }
 0x309   :  { %730 = vst [vmem:[%s1428_s6 + $0x10] sm:$0xff] %v726_v26  ;;  %731 = vst [vmem:[%s1428_s6 + $0x18] sm:$0xff] %v727_v27 }

</bundles_post_ra>
